<compile_context>
chip_gen: v5e
topology: v5e:2x2
jax: 0.10.0
libtpu: 0.0.40
codegen_flags: <defaults>
</compile_context>

<pallas_src>
import jax
import jax.numpy as jnp
from jax.experimental import pallas as pl
from jax.experimental.pallas import tpu as pltpu


def _vmem_spec():
    return pl.BlockSpec(memory_space=pltpu.MemorySpace.VMEM)


# ----------------- kernel 1: one-shot key / value projection ------------------ #

def kv_proj_kernel(enc_ref, wk_ref, bk_ref, wv_ref, bv_ref, k_ref, v_ref):
    Bp, S, H2 = enc_ref.shape
    K = wk_ref.shape[1]
    V = wv_ref.shape[1]
    flat = enc_ref[...].reshape(Bp * S, H2)                              # bf16
    k = jnp.dot(flat, wk_ref[...], preferred_element_type=jnp.float32) + bk_ref[...]
    v = jnp.dot(flat, wv_ref[...], preferred_element_type=jnp.float32) + bv_ref[...]
    k_ref[...] = k.reshape(Bp, S, K).astype(k_ref.dtype)
    v_ref[...] = v.reshape(Bp, S, V).astype(v_ref.dtype)


# ----------------- kernel 2: full sequential decode (fori_loop) ---------------- #

def decoder_kernel(
    char_emb_ref,            # (T, Bp, E)  f32   teacher-forced char embeddings
    key_ref, value_ref,      # (Bp, S, K), (Bp, S, V)  bf16
    lens_ref,                # (Bp, 1) int32
    wq_ref, bq_ref,          # (E, K) bf16, (1, K) f32
    w1e_ref, w1v_ref, u1_ref, b1_ref,   # (4,E,D1),(4,V,D1),(4,D1,D1) bf16, (4,1,D1) f32
    w2_ref, u2_ref, b2_ref,             # (4,D1,K),(4,K,K) bf16, (4,1,K) f32
    wfco_ref, wfcc_ref, bfc_ref,        # (K,E),(V,E) bf16, (1,E) f32
    wchar_ref, bchar_ref,               # (E,Vp) bf16 (tied embedding.T, vocab-padded), (1,Vp) f32
    out_ref,                            # (T, Bp, Vp) f32
):
    T, Bp, E = char_emb_ref.shape
    S = key_ref.shape[1]
    K = key_ref.shape[2]
    D1 = u1_ref.shape[-1]

    scale = jnp.float32(1.0 / (K ** 0.5))

    # Loop-invariant pieces, hoisted once.
    seq_ids = jax.lax.broadcasted_iota(jnp.int32, (Bp, S), 1)
    pad_mask = seq_ids >= lens_ref[...]                                  # (Bp, S)
    key_bf = key_ref[...]                                                # (Bp, S, K) bf16
    value_bf = value_ref[...]                                            # (Bp, S, V) bf16

    # Scaled dot-product attention with length masking (softmax in f32).
    def attend(query_f32):                                               # (Bp, K) f32
        q3 = query_f32.astype(jnp.bfloat16)[:, None, :]                  # (Bp, 1, K)
        energy = jnp.einsum("bqk,bsk->bqs", q3, key_bf,
                            preferred_element_type=jnp.float32)[:, 0, :] * scale
        energy = jnp.where(pad_mask, jnp.float32(-1e9), energy)
        m = jnp.max(energy, axis=1, keepdims=True)
        p = jnp.exp(energy - m)
        denom = jnp.sum(p, axis=1, keepdims=True)
        attn = p * pl.reciprocal(denom, approx=True)                     # EUP slot
        ctx = jnp.einsum("bqs,bsv->bqv", attn.astype(jnp.bfloat16)[:, None, :],
                         value_bf, preferred_element_type=jnp.float32)[:, 0, :]
        return ctx                                                       # (Bp, V) f32

    # PyTorch LSTMCell, gate order (i, f, g, o); one matmul per gate (lane-aligned,
    # no in-vreg gate slicing); cell-state math in f32.
    def lstm_cell(x_list, w_refs, h, c, u_ref, b_ref):
        h_bf = h.astype(jnp.bfloat16)
        gates = []
        for g in range(4):
            acc = b_ref[g]                                               # (1, H) f32
            for x, w in zip(x_list, w_refs):
                acc = acc + jnp.dot(x, w[g], preferred_element_type=jnp.float32)
            acc = acc + jnp.dot(h_bf, u_ref[g], preferred_element_type=jnp.float32)
            gates.append(acc)
        i_g = jax.nn.sigmoid(gates[0])
        f_g = jax.nn.sigmoid(gates[1])
        g_g = jnp.tanh(gates[2])
        o_g = jax.nn.sigmoid(gates[3])
        c_new = f_g * c + i_g * g_g
        h_new = o_g * jnp.tanh(c_new)
        return h_new, c_new

    def step(t, carry):
        h1, c1, h2, c2 = carry
        char_embed = char_emb_ref[t]                                     # (Bp, E) f32
        ce_bf = char_embed.astype(jnp.bfloat16)

        query = (jnp.dot(ce_bf, wq_ref[...], preferred_element_type=jnp.float32)
                 + bq_ref[...])
        ctx1 = attend(query)

        h1, c1 = lstm_cell([ce_bf, ctx1.astype(jnp.bfloat16)],
                           [w1e_ref, w1v_ref], h1, c1, u1_ref, b1_ref)
        h2, c2 = lstm_cell([h1.astype(jnp.bfloat16)],
                           [w2_ref], h2, c2, u2_ref, b2_ref)

        ctx2 = attend(h2)

        fc = (jnp.dot(h2.astype(jnp.bfloat16), wfco_ref[...],
                      preferred_element_type=jnp.float32)
              + jnp.dot(ctx2.astype(jnp.bfloat16), wfcc_ref[...],
                        preferred_element_type=jnp.float32)
              + bfc_ref[...])
        fc = jnp.clip(fc, -1.0, 1.0)                                     # nn.Hardtanh

        logits = (jnp.dot(fc.astype(jnp.bfloat16), wchar_ref[...],
                          preferred_element_type=jnp.float32)
                  + bchar_ref[...])                                      # (Bp, Vp) f32
        out_ref[t] = logits
        return (h1, c1, h2, c2)

    init = (jnp.zeros((Bp, D1), jnp.float32), jnp.zeros((Bp, D1), jnp.float32),
            jnp.zeros((Bp, K), jnp.float32), jnp.zeros((Bp, K), jnp.float32))
    # T is small/static here; full unroll gives the LLO scheduler visibility.
    jax.lax.fori_loop(0, T, step, init, unroll=True)


# ---------------------------------- wrapper ------------------------------------ #

def decoder_forward(params, encoder_output, lens, text):
    """encoder_output: (B, S, 2H) f32; lens: (B,) int32; text: (B, T) int32.
    Returns (B, T, vocab) f32, matching the PyTorch Decoder.forward output."""
    B, S, H2 = encoder_output.shape
    T = text.shape[1]
    emb_w = params["emb"]                                   # (vocab, E)
    vocab, E = emb_w.shape
    K = params["wqT"].shape[1]
    V = params["wvT"].shape[1]
    D1 = params["whh1T"].shape[0]

    Bp = max(8, ((B + 7) // 8) * 8)                         # sublane-dense batch
    Vp = ((vocab + 127) // 128) * 128                       # lane-dense vocab
    pad_b = Bp - B

    # Teacher-forced char embeddings (step 0 uses embedding row 0: argmax(zeros)==0).
    embeddings = emb_w[text]                                # (B, T, E)
    step0 = jnp.broadcast_to(emb_w[0][None, :], (B, E))[None]            # (1, B, E)
    rest = jnp.transpose(embeddings[:, :T - 1, :], (1, 0, 2))            # (T-1, B, E)
    char_embeds = jnp.concatenate([step0, rest], axis=0)                 # (T, B, E)
    char_embeds = jnp.pad(char_embeds, ((0, 0), (0, pad_b), (0, 0)))     # (T, Bp, E)

    lens2d = jnp.pad(lens.astype(jnp.int32).reshape(B, 1), ((0, pad_b), (0, 0)),
                     constant_values=S)                                  # (Bp, 1)

    # --- key/value projection: one-shot kernel, off the sequential decode loop ---
    enc_p = jnp.pad(encoder_output, ((0, pad_b), (0, 0), (0, 0))).astype(jnp.bfloat16)
    cparams = pltpu.CompilerParams(vmem_limit_bytes=64 * 1024 * 1024)
    key, value = pl.pallas_call(
        kv_proj_kernel,
        out_shape=(jax.ShapeDtypeStruct((Bp, S, K), jnp.bfloat16),
                   jax.ShapeDtypeStruct((Bp, S, V), jnp.bfloat16)),
        in_specs=[_vmem_spec() for _ in range(5)],
        out_specs=(_vmem_spec(), _vmem_spec()),
        compiler_params=cparams,
    )(enc_p, params["wkT"].astype(jnp.bfloat16), params["bk"],
      params["wvT"].astype(jnp.bfloat16), params["bv"])

    # --- split fused LSTM weights into per-gate (4, in, H) slabs (gate order i,f,g,o) ---
    def split_w(wT, H):   # (in, 4H) -> (4, in, H)
        return jnp.transpose(wT.reshape(wT.shape[0], 4, H), (1, 0, 2))

    def split_b(b, H):    # (1, 4H) -> (4, 1, H)
        return jnp.transpose(b.reshape(1, 4, H), (1, 0, 2))

    bf16 = jnp.bfloat16
    w1e = split_w(params["wih1eT"], D1).astype(bf16)
    w1v = split_w(params["wih1vT"], D1).astype(bf16)
    u1 = split_w(params["whh1T"], D1).astype(bf16)
    b1g = split_b(params["b1"], D1)
    w2 = split_w(params["wih2T"], K).astype(bf16)
    u2 = split_w(params["whh2T"], K).astype(bf16)
    b2g = split_b(params["b2"], K)

    wchar_p = jnp.pad(params["wcharT"], ((0, 0), (0, Vp - vocab))).astype(bf16)
    bchar_p = jnp.pad(params["bchar"], ((0, 0), (0, Vp - vocab)))

    out = pl.pallas_call(
        decoder_kernel,
        out_shape=jax.ShapeDtypeStruct((T, Bp, Vp), jnp.float32),
        in_specs=[_vmem_spec() for _ in range(18)],
        out_specs=_vmem_spec(),
        compiler_params=cparams,
    )(
        char_embeds, key, value, lens2d,
        params["wqT"].astype(bf16), params["bq"],
        w1e, w1v, u1, b1g,
        w2, u2, b2g,
        params["wfcoT"].astype(bf16), params["wfccT"].astype(bf16), params["bfc"],
        wchar_p, bchar_p,
    )
    # Strip batch/vocab padding, (T, B, vocab) -> (B, T, vocab).
    return jnp.transpose(out[:, :B, :vocab], (1, 0, 2))


# ----------------------------- pure-JAX reference ------------------------------ #

def decoder_reference(params, encoder_output, lens, text):
    B, S, H2 = encoder_output.shape
    T = text.shape[1]
    emb_w = params["emb"]
    E = emb_w.shape[1]
    K = params["wqT"].shape[1]
    D1 = params["whh1T"].shape[0]

    key = encoder_output @ params["wkT"] + params["bk"]
    value = encoder_output @ params["wvT"] + params["bv"]
    mask = jnp.arange(S)[None, :] >= lens[:, None]

    def attend(q):
        e = jnp.einsum("bsk,bk->bs", key, q) / jnp.sqrt(jnp.float32(K))
        e = jnp.where(mask, -1e9, e)
        a = jax.nn.softmax(e, axis=1)
        return jnp.einsum("bs,bsv->bv", a, value)

    def lstm(gates, h, c):
        H = h.shape[-1]
        i = jax.nn.sigmoid(gates[:, :H]); f = jax.nn.sigmoid(gates[:, H:2 * H])
        g = jnp.tanh(gates[:, 2 * H:3 * H]); o = jax.nn.sigmoid(gates[:, 3 * H:])
        c = f * c + i * g
        return o * jnp.tanh(c), c

    embeddings = emb_w[text]
    h1 = c1 = jnp.zeros((B, D1), jnp.float32)
    h2 = c2 = jnp.zeros((B, K), jnp.float32)
    preds = []
    for i in range(T):
        char_embed = jnp.broadcast_to(emb_w[0], (B, E)) if i == 0 else embeddings[:, i - 1, :]
        q = char_embed @ params["wqT"] + params["bq"]
        ctx1 = attend(q)
        g1 = (char_embed @ params["wih1eT"] + ctx1 @ params["wih1vT"]
              + h1 @ params["whh1T"] + params["b1"])
        h1, c1 = lstm(g1, h1, c1)
        g2 = h1 @ params["wih2T"] + h2 @ params["whh2T"] + params["b2"]
        h2, c2 = lstm(g2, h2, c2)
        ctx2 = attend(h2)
        fc = jnp.clip(h2 @ params["wfcoT"] + ctx2 @ params["wfccT"] + params["bfc"], -1.0, 1.0)
        preds.append(fc @ params["wcharT"] + params["bchar"])
    return jnp.stack(preds, axis=1)


# ------------------------------------ main -------------------------------------- #

if __name__ == "__main__":
    # small config consistent with the module's __init__
    vocab_size = 40
    embedding_size = 16      # E
    encoder_hidden_size = 16 # -> encoder feature dim 2H = 32
    key_size = 16            # K (also lstm2 hidden size)
    value_size = 16          # V
    decoder_hidden_size = 32 # D1
    B, S, T = 2, 8, 6

    key0 = jax.random.PRNGKey(0)
    ks = jax.random.split(key0, 32)
    g = lambda k, shape: (0.1 * jax.random.normal(k, shape)).astype(jnp.float32)

    H2 = 2 * encoder_hidden_size
    E, K, V, D1 = embedding_size, key_size, value_size, decoder_hidden_size

    emb = g(ks[0], (vocab_size, E))
    params = dict(
        emb=emb,
        wkT=g(ks[1], (H2, K)),  bk=g(ks[2], (1, K)),
        wvT=g(ks[3], (H2, V)),  bv=g(ks[4], (1, V)),
        wqT=g(ks[5], (E, K)),   bq=g(ks[6], (1, K)),
        wih1eT=g(ks[7], (E, 4 * D1)), wih1vT=g(ks[8], (V, 4 * D1)),
        whh1T=g(ks[9], (D1, 4 * D1)), b1=g(ks[10], (1, 4 * D1)),
        wih2T=g(ks[11], (D1, 4 * K)), whh2T=g(ks[12], (K, 4 * K)), b2=g(ks[13], (1, 4 * K)),
        wfcoT=g(ks[14], (K, E)), wfccT=g(ks[15], (V, E)), bfc=g(ks[16], (1, E)),
        wcharT=emb.T,            # tied: character_prob.weight = embedding.weight
        bchar=g(ks[17], (1, vocab_size)),
    )

    encoder_output = g(ks[20], (B, S, H2)) * 10.0
    lens = jnp.array([S, S - 3], dtype=jnp.int32)
    text = jax.random.randint(ks[21], (B, T), 0, vocab_size, dtype=jnp.int32)

    out = jax.block_until_ready(decoder_forward(params, encoder_output, lens, text))
    ref = jax.block_until_ready(decoder_reference(params, encoder_output, lens, text))

    assert out.shape == (B, T, vocab_size), out.shape
    # Tolerance accommodates bf16 matmul inputs (f32 accumulation) vs. the f32 reference.
    err = float(jnp.max(jnp.abs(out - ref)))
    assert jnp.allclose(out, ref, atol=2e-2, rtol=2e-2), err
    # TODO(synk): teacher-forcing randomness, LockedDropout masks and BeamSearch are
    # host-side / data-dependent control flow; this kernel implements the deterministic
    # forward path (teacher_forcing_ratio=1.0, dropout=0.0, hidden=None). The v7x
    # dual-TensorCore batch split ("parallel" batch grid axis) is skipped at batch=2.
    print("KERNEL_OK")
</pallas_src>

<mosaic_0001>
module attributes {stable_mosaic.version = 11 : i64} {
  func.func @kv_proj_kernel(%arg0: memref<8x8x32xbf16, #tpu.memory_space<vmem>>, %arg1: memref<32x16xbf16, #tpu.memory_space<vmem>>, %arg2: memref<1x16xf32, #tpu.memory_space<vmem>>, %arg3: memref<32x16xbf16, #tpu.memory_space<vmem>>, %arg4: memref<1x16xf32, #tpu.memory_space<vmem>>, %arg5: memref<8x8x16xbf16, #tpu.memory_space<vmem>>, %arg6: memref<8x8x16xbf16, #tpu.memory_space<vmem>>) attributes {dimension_semantics = [], scalar_prefetch = 0 : i64, scratch_operands = 0 : i64, tpu.core_type = #tpu.core_type<tc>} {
    %c0 = arith.constant 0 : index
    %c0_0 = arith.constant 0 : index
    %c0_1 = arith.constant 0 : index
    %0 = vector.load %arg0[%c0, %c0_0, %c0_1] : memref<8x8x32xbf16, #tpu.memory_space<vmem>>, vector<8x8x32xbf16>
    %1 = vector.shape_cast %0 : vector<8x8x32xbf16> to vector<64x32xbf16>
    %c0_2 = arith.constant 0 : index
    %c0_3 = arith.constant 0 : index
    %2 = vector.load %arg1[%c0_2, %c0_3] : memref<32x16xbf16, #tpu.memory_space<vmem>>, vector<32x16xbf16>
    %cst = arith.constant dense<0.000000e+00> : vector<64x16xf32>
    %3 = tpu.matmul %1, %2, %cst {dimension_numbers = #tpu.dot_dimension_numbers<[1], [0], [0], [1], [0, 0, 1, 1], [], []>} : vector<64x32xbf16>, vector<32x16xbf16>, vector<64x16xf32> -> vector<64x16xf32>
    %c0_4 = arith.constant 0 : index
    %c0_5 = arith.constant 0 : index
    %4 = vector.load %arg2[%c0_4, %c0_5] : memref<1x16xf32, #tpu.memory_space<vmem>>, vector<1x16xf32>
    %5 = vector.broadcast %4 : vector<1x16xf32> to vector<64x16xf32>
    %6 = arith.addf %3, %5 : vector<64x16xf32>
    %c0_6 = arith.constant 0 : index
    %c0_7 = arith.constant 0 : index
    %7 = vector.load %arg3[%c0_6, %c0_7] : memref<32x16xbf16, #tpu.memory_space<vmem>>, vector<32x16xbf16>
    %cst_8 = arith.constant dense<0.000000e+00> : vector<64x16xf32>
    %8 = tpu.matmul %1, %7, %cst_8 {dimension_numbers = #tpu.dot_dimension_numbers<[1], [0], [0], [1], [0, 0, 1, 1], [], []>} : vector<64x32xbf16>, vector<32x16xbf16>, vector<64x16xf32> -> vector<64x16xf32>
    %c0_9 = arith.constant 0 : index
    %c0_10 = arith.constant 0 : index
    %9 = vector.load %arg4[%c0_9, %c0_10] : memref<1x16xf32, #tpu.memory_space<vmem>>, vector<1x16xf32>
    %10 = vector.broadcast %9 : vector<1x16xf32> to vector<64x16xf32>
    %11 = arith.addf %8, %10 : vector<64x16xf32>
    %12 = vector.shape_cast %6 : vector<64x16xf32> to vector<8x8x16xf32>
    %13 = arith.truncf %12 : vector<8x8x16xf32> to vector<8x8x16xbf16>
    %c0_11 = arith.constant 0 : index
    %c0_12 = arith.constant 0 : index
    %c0_13 = arith.constant 0 : index
    %14 = vector.load %arg5[%c0_11, %c0_12, %c0_13] : memref<8x8x16xbf16, #tpu.memory_space<vmem>>, vector<8x8x16xbf16>
    tpu.vector_store %arg5[%c0_11, %c0_12, %c0_13], %13 {strides = array<i32>} : memref<8x8x16xbf16, #tpu.memory_space<vmem>>, vector<8x8x16xbf16>,
    %15 = vector.shape_cast %11 : vector<64x16xf32> to vector<8x8x16xf32>
    %16 = arith.truncf %15 : vector<8x8x16xf32> to vector<8x8x16xbf16>
    %c0_14 = arith.constant 0 : index
    %c0_15 = arith.constant 0 : index
    %c0_16 = arith.constant 0 : index
    %17 = vector.load %arg6[%c0_14, %c0_15, %c0_16] : memref<8x8x16xbf16, #tpu.memory_space<vmem>>, vector<8x8x16xbf16>
    tpu.vector_store %arg6[%c0_14, %c0_15, %c0_16], %16 {strides = array<i32>} : memref<8x8x16xbf16, #tpu.memory_space<vmem>>, vector<8x8x16xbf16>,
    return
  }
}

</mosaic_0001>

<bundles_post_ra>
// kernel: tpu_custom_call.1
= control target key start
LH: loop header
LB: loop body
LE: loop exit
PB: predicated region body
PF: predicated region fallthrough
CT: control target
= control target key end

     0   :  { %12 = vsyncpa [#allocation3], 0  ;;  %s454_s0 = inlined_call_operand.vmem [shape: bf16[8,8,32], index: 0, kind: input, shape index: {}]   ;;  %s455_s1 = inlined_call_operand.vmem [shape: bf16[32,16], index: 1, kind: input, shape index: {}]   ;;  %s456_s2 = inlined_call_operand.vmem [shape: f32[1,16], index: 2, kind: input, shape index: {}]   ;;  %s457_s3 = inlined_call_operand.vmem [shape: bf16[32,16], index: 3, kind: input, shape index: {}]   ;;  %s458_s4 = inlined_call_operand.vmem [shape: f32[1,16], index: 4, kind: input, shape index: {}]   ;;  %s459_s5 = inlined_call_operand.hbm [shape: bf16[8,8,16], index: 5, kind: output, shape index: {0}]   ;;  %s460_s6 = inlined_call_operand.hbm [shape: bf16[8,8,16], index: 6, kind: output, shape index: {1}]  }
   0x1   :  { %v278_v0 = vld [vmem:[%s455_s1 + $0x8] sm:$0xff]  ;;  %v277_v2 = vld [vmem:[%s455_s1] sm:$0xff] }
   0x2   :  { %v280_v1 = vld [vmem:[%s457_s3 + $0x8] sm:$0xff]  ;;  %92 = vmatpush.bf16.msra.mxu0 %v278_v0  ;;  %281 = vmatpush.bf16.msra.mxu2 %v278_v0  ;;  %v279_v3 = vld [vmem:[%s457_s3] sm:$0xff] }
   0x3   :  { %141 = vmatpush.bf16.msra.mxu1 %v280_v1  ;;  %283 = vmatpush.bf16.msra.mxu3 %v280_v1 }
   0x4   :  { %13 = vsyncpa [#allocation5], 0  ;;  %v273_v4 = vld [vmem:[%s454_s0] sm:$0xff]  ;;  %v275_v5 = vld [vmem:[%s454_s0 + $0x10] sm:$0xff]  ;;  %vm73_vm0 = vcmask 261120   ;;  %vm172_vm1 = vcmask 125952  }
   0x5   :  { %v274_v6 = vld [vmem:[%s454_s0 + $0x8] sm:$0xff]  ;;  %v276_v7 = vld [vmem:[%s454_s0 + $0x18] sm:$0xff]  ;;  %v409_v8 = vld [vmem:[%s456_s2] ss:$0 sm:$0xff]  ;;  %s343_s0 = smov [#allocation2]   ;;  %s203_s16 = sshll.u32 %s459_s5, 4  ;;  %s204_s16 = int_to_ptr.hbm [resolvable:$true] %s203_s16 }
   0x6   :  { %93 = vmatpush.bf16.msra.mxu0 %v277_v2  ;;  %282 = vmatpush.bf16.msra.mxu2 %v277_v2  ;;  %v414_v9 = vld [vmem:[%s458_s4] ss:$0 sm:$0xff]  ;;  %s201_s2 = sshll.u32 %s343_s0, 4  ;;  %s344_s17 = smov [#allocation4]   ;;  %s202_s2 = int_to_ptr.vmem [resolvable:$true] %s201_s2 }
   0x7   :  { %142 = vmatpush.bf16.msra.mxu1 %v279_v3  ;;  %284 = vmatpush.bf16.msra.mxu3 %v279_v3  ;;  %s214_s18 = sshll.u32 %s344_s17, 4  ;;  %s216_s21 = sshll.u32 %s460_s6, 4  ;;  %s215_s18 = int_to_ptr.vmem [resolvable:$true] %s214_s18  ;;  %s217_s21 = int_to_ptr.hbm [resolvable:$true] %s216_s21 }
   0x8   :  { %s345_s5 = smov 64   ;;  %s346_s22 = smov 4  }
   0x9   :  { %257 = vmatmul.msk.bf16.vlgmr.msra.gmra.mxu0 %vm73_vm0, %v273_v4  ;;  %259 = vmatmul.msk.bf16.vlgmr.msra.gmra.mxu2 %vm73_vm0, %v275_v5 }
   0xa   :  { %269 = vmatmul.msk.bf16.vlgmr.msra.gmra.mxu1 %vm73_vm0, %v273_v4  ;;  %271 = vmatmul.msk.bf16.vlgmr.msra.gmra.mxu3 %vm73_vm0, %v275_v5 }
  0x19   :  { %258 = vmatmul.msk.bf16.gmra.mxu0 %vm73_vm0, %v274_v6  ;;  %260 = vmatmul.msk.bf16.gmra.mxu2 %vm73_vm0, %v276_v7 }
  0x1a   :  { %270 = vmatmul.msk.bf16.gmra.mxu1 %vm73_vm0, %v274_v6  ;;  %272 = vmatmul.msk.bf16.gmra.mxu3 %vm73_vm0, %v276_v7 }
  0x86   :  { %v95_v10 = vpop.f32.mrf.mxu0 }
  0x87   :  { %v96_v11 = vadd.f32 %v409_v8, %v95_v10  ;;  %v144_v12 = vpop.f32.mrf.mxu1 }
  0x88   :  { %v145_v13 = vadd.f32 %v414_v9, %v144_v12 }
  0x89   :  { %v164_v14 = vpack.c.bf16 %v96_v11, %v96_v11 }
  0x8a   :  { %v181_v15 = vpack.c.bf16 %v145_v13, %v145_v13 }
  0x8b   :  { %173 = vst.msk [vmem:[#allocation2] sm:$0xf] %vm172_vm1, %v164_v14 }
  0x8c   :  { %189 = vst.msk [vmem:[#allocation4] sm:$0xf] %vm172_vm1, %v181_v15  ;;  %v105_v16 = vpop.f32.mrf.mxu2 }
  0x8d   :  { %v106_v17 = vadd.f32 %v409_v8, %v105_v16  ;;  %v154_v18 = vpop.f32.mrf.mxu3 }
  0x8e   :  { %v155_v19 = vadd.f32 %v414_v9, %v154_v18  ;;  %v97_v20 = vpop.f32.mrf.mxu0 }
  0x8f   :  { %v168_v21 = vpack.c.bf16 %v106_v17, %v106_v17  ;;  %v98_v22 = vadd.f32 %v409_v8, %v97_v20  ;;  %v146_v23 = vpop.f32.mrf.mxu1 }
  0x90   :  { %v185_v24 = vpack.c.bf16 %v155_v19, %v155_v19  ;;  %v147_v25 = vadd.f32 %v414_v9, %v146_v23 }
  0x91   :  { %177 = vst.msk [vmem:[#allocation2 + $0x10] sm:$0xf] %vm172_vm1, %v168_v21  ;;  %v165_v26 = vpack.c.bf16 %v98_v22, %v98_v22 }
  0x92   :  { %193 = vst.msk [vmem:[#allocation4 + $0x10] sm:$0xf] %vm172_vm1, %v185_v24  ;;  %v182_v27 = vpack.c.bf16 %v147_v25, %v147_v25 }
  0x93   :  { %174 = vst.msk [vmem:[#allocation2 + $0x4] sm:$0xf] %vm172_vm1, %v165_v26 }
  0x94   :  { %190 = vst.msk [vmem:[#allocation4 + $0x4] sm:$0xf] %vm172_vm1, %v182_v27  ;;  %v107_v28 = vpop.f32.mrf.mxu2 }
  0x95   :  { %v108_v29 = vadd.f32 %v409_v8, %v107_v28  ;;  %v156_v30 = vpop.f32.mrf.mxu3 }
  0x96   :  { %v157_v31 = vadd.f32 %v414_v9, %v156_v30  ;;  %v100_v32 = vpop.f32.mrf.mxu0 }
  0x97   :  { %v169_v33 = vpack.c.bf16 %v108_v29, %v108_v29  ;;  %v101_v34 = vadd.f32 %v409_v8, %v100_v32  ;;  %v149_v35 = vpop.f32.mrf.mxu1 }
  0x98   :  { %v186_v36 = vpack.c.bf16 %v157_v31, %v157_v31  ;;  %v150_v37 = vadd.f32 %v414_v9, %v149_v35 }
  0x99   :  { %178 = vst.msk [vmem:[#allocation2 + $0x14] sm:$0xf] %vm172_vm1, %v169_v33  ;;  %v166_v38 = vpack.c.bf16 %v101_v34, %v101_v34 }
  0x9a   :  { %194 = vst.msk [vmem:[#allocation4 + $0x14] sm:$0xf] %vm172_vm1, %v186_v36  ;;  %v183_v39 = vpack.c.bf16 %v150_v37, %v150_v37 }
  0x9b   :  { %175 = vst.msk [vmem:[#allocation2 + $0x8] sm:$0xf] %vm172_vm1, %v166_v38 }
  0x9c   :  { %191 = vst.msk [vmem:[#allocation4 + $0x8] sm:$0xf] %vm172_vm1, %v183_v39  ;;  %v110_v40 = vpop.f32.mrf.mxu2 }
  0x9d   :  { %v111_v41 = vadd.f32 %v409_v8, %v110_v40  ;;  %v159_v42 = vpop.f32.mrf.mxu3 }
  0x9e   :  { %v160_v43 = vadd.f32 %v414_v9, %v159_v42  ;;  %v102_v44 = vpop.f32.mrf.mxu0 }
  0x9f   :  { %v170_v45 = vpack.c.bf16 %v111_v41, %v111_v41  ;;  %v103_v46 = vadd.f32 %v409_v8, %v102_v44  ;;  %v151_v47 = vpop.f32.mrf.mxu1 }
  0xa0   :  { %v187_v48 = vpack.c.bf16 %v160_v43, %v160_v43  ;;  %v152_v49 = vadd.f32 %v414_v9, %v151_v47 }
  0xa1   :  { %179 = vst.msk [vmem:[#allocation2 + $0x18] sm:$0xf] %vm172_vm1, %v170_v45  ;;  %v167_v50 = vpack.c.bf16 %v103_v46, %v103_v46 }
  0xa2   :  { %195 = vst.msk [vmem:[#allocation4 + $0x18] sm:$0xf] %vm172_vm1, %v187_v48  ;;  %v184_v51 = vpack.c.bf16 %v152_v49, %v152_v49 }
  0xa3   :  { %176 = vst.msk [vmem:[#allocation2 + $0xc] sm:$0xf] %vm172_vm1, %v167_v50 }
  0xa4   :  { %192 = vst.msk [vmem:[#allocation4 + $0xc] sm:$0xf] %vm172_vm1, %v184_v51  ;;  %v112_v52 = vpop.f32.mrf.mxu2 }
  0xa5   :  { %v113_v53 = vadd.f32 %v409_v8, %v112_v52  ;;  %v161_v54 = vpop.f32.mrf.mxu3 }
  0xa6   :  { %v162_v55 = vadd.f32 %v414_v9, %v161_v54 }
  0xa7   :  { %v171_v56 = vpack.c.bf16 %v113_v53, %v113_v53 }
  0xa8   :  { %v188_v57 = vpack.c.bf16 %v162_v55, %v162_v55 }
  0xa9   :  { %180 = vst.msk [vmem:[#allocation2 + $0x1c] sm:$0xf] %vm172_vm1, %v171_v56 }
  0xaa   :  { %196 = vst.msk [vmem:[#allocation4 + $0x1c] sm:$0xf] %vm172_vm1, %v188_v57  ;;  %209 = dma.vmem_to_hbm [thread:$0]  %s202_s2, 512, %s204_s16, [#allocation3], %s345_s5, %s345_s5, %s346_s22  }
  0xab   :  { %222 = dma.vmem_to_hbm [thread:$0]  %s215_s18, 512, %s217_s21, [#allocation5], %s345_s5, %s345_s5, %s346_s22  }
  0xac   :  { %339 = dma.done.wait [#allocation3], 512  }
  0xad   :  { %340 = vsyncadd [#allocation3], 4294966784 }
  0xae   :  { %341 = dma.done.wait [#allocation5], 512  }
  0xaf   :  { %342 = vsyncadd [#allocation5], 4294966784 }
  0xb0   :  { %231 = vsyncpa [#allocation3], 1 }
  0xb1   :  { %232 = vsyncpa [#allocation5], 1 }

</bundles_post_ra>
